<compile_context>
chip_gen: v5e
topology: v5e:2x2
jax: 0.10.0
libtpu: 0.0.40
codegen_flags: <defaults>
</compile_context>

<pallas_src>
import jax
import jax.numpy as jnp
from jax.experimental import pallas as pl
from jax.experimental.pallas import tpu as pltpu

OBS_DIM = 4      # CartPole observation size
HIDDEN = 128     # base hidden width (Critic head expects 128)
OUT = 1          # scalar value


def _round_up(n: int, m: int) -> int:
    return ((n + m - 1) // m) * m


def critic_kernel(xt_ref, w1_ref, b1_ref, w2_ref, b2_ref, o_ref):
    # xt_ref: (OBS_DIM, BM)   batch on the lane axis
    # w1_ref: (HIDDEN, OBS_DIM)  -- native PyTorch Linear(4,128).weight layout
    # b1_ref: (HIDDEN, 1)
    # w2_ref: (HIDDEN, 1)        -- Linear(128,1).weight transposed
    # b2_ref: (1,) scalar in SMEM
    # o_ref:  (1, BM)
    xt = xt_ref[...]                                   # (OBS_DIM, BM)
    w1 = w1_ref[...]                                   # (HIDDEN, OBS_DIM)

    # Hidden layer: h_T[j, b] = sum_k w1[j, k] * x[b, k] + b1[j]
    # K = OBS_DIM = 4, so do it as 4 unrolled broadcast outer-product FMAs on
    # the VPU instead of pushing a K=4 contraction through the MXU.
    h = b1_ref[...]                                    # (HIDDEN, 1) -> lanes
    for k in range(OBS_DIM):
        h = h + w1[:, k:k + 1] * xt[k:k + 1, :]        # (HIDDEN, BM)
    h = jnp.maximum(h, 0.0)                            # ReLU

    # Value head: N = 1, so VPU multiply + sublane (XLU) reduction instead of
    # a (BM,128)@(128,1) matmul.
    v = jnp.sum(h * w2_ref[...], axis=0, keepdims=True)   # (1, BM)
    o_ref[...] = (v + b2_ref[0]).astype(o_ref.dtype)


def critic_forward(x, w1, b1, w2, b2, *, block_batch=512):
    """x: (B, OBS_DIM) float32 -> (B, 1) float32."""
    B = x.shape[0]
    # Batch tile: lane-aligned (multiple of 128), capped at block_batch.
    bm = min(block_batch, _round_up(B, 128))
    b_pad = _round_up(B, bm)

    # Batch-on-lanes layout; zero-pad the batch tail (sliced away afterwards).
    xt = jnp.pad(x.T, ((0, 0), (0, b_pad - B)))        # (OBS_DIM, b_pad)

    out = pl.pallas_call(
        critic_kernel,
        out_shape=jax.ShapeDtypeStruct((1, b_pad), jnp.float32),
        grid=(b_pad // bm,),
        in_specs=[
            pl.BlockSpec((OBS_DIM, bm), lambda i: (0, i)),       # x tile
            pl.BlockSpec((HIDDEN, OBS_DIM), lambda i: (0, 0)),   # resident W1
            pl.BlockSpec((HIDDEN, 1), lambda i: (0, 0)),         # resident b1
            pl.BlockSpec((HIDDEN, 1), lambda i: (0, 0)),         # resident W2
            pl.BlockSpec(memory_space=pltpu.MemorySpace.SMEM),   # b2 scalar
        ],
        out_specs=pl.BlockSpec((1, bm), lambda i: (0, i)),
        compiler_params=pltpu.CompilerParams(
            dimension_semantics=("parallel",)),
    )(xt, w1, b1, w2, b2)

    return out[0, :B].reshape(B, OUT)


def init_params(key):
    """Deterministic init (PyTorch-style uniform fan-in bounds)."""
    k1, k2, k3, k4 = jax.random.split(key, 4)
    bound1 = 1.0 / jnp.sqrt(OBS_DIM)
    bound2 = 1.0 / jnp.sqrt(HIDDEN)
    w1 = jax.random.uniform(k1, (HIDDEN, OBS_DIM), jnp.float32, -bound1, bound1)
    b1 = jax.random.uniform(k2, (HIDDEN, 1), jnp.float32, -bound1, bound1)
    w2 = jax.random.uniform(k3, (HIDDEN, 1), jnp.float32, -bound2, bound2)
    b2 = jax.random.uniform(k4, (1,), jnp.float32, -bound2, bound2)
    return w1, b1, w2, b2


def reference_forward(x, w1, b1, w2, b2):
    h = jnp.maximum(x @ w1.T + b1[:, 0], 0.0)
    return h @ w2 + b2[0]


if __name__ == "__main__":
    key = jax.random.PRNGKey(0)
    k_params, k_x1, k_x2 = jax.random.split(key, 3)
    params = init_params(k_params)

    # Small batch: single grid step, batch padded to one 128-lane tile.
    x_small = jax.random.normal(k_x1, (8, OBS_DIM), jnp.float32)
    out_small = jax.block_until_ready(critic_forward(x_small, *params))
    ref_small = reference_forward(x_small, *params)
    assert out_small.shape == (8, OUT), out_small.shape
    assert jnp.allclose(out_small, ref_small, atol=1e-5, rtol=1e-5)

    # Larger, non-multiple batch: exercises grid > 1 and tail padding/masking.
    x_big = jax.random.normal(k_x2, (700, OBS_DIM), jnp.float32)
    out_big = jax.block_until_ready(critic_forward(x_big, *params))
    ref_big = reference_forward(x_big, *params)
    assert out_big.shape == (700, OUT), out_big.shape
    assert jnp.allclose(out_big, ref_big, atol=1e-5, rtol=1e-5)

    print("KERNEL_OK")
</pallas_src>

<mosaic_0001>
module attributes {stable_mosaic.version = 11 : i64} {
  func.func @critic_kernel(%arg0: i32, %arg1: memref<4x128xf32, #tpu.memory_space<vmem>>, %arg2: memref<128x4xf32, #tpu.memory_space<vmem>>, %arg3: memref<128x1xf32, #tpu.memory_space<vmem>>, %arg4: memref<128x1xf32, #tpu.memory_space<vmem>>, %arg5: memref<1xf32, #tpu.memory_space<smem>>, %arg6: memref<1x128xf32, #tpu.memory_space<vmem>>) attributes {dimension_semantics = [#tpu.dimension_semantics<parallel>], iteration_bounds = array<i64: 1>, scalar_prefetch = 0 : i64, scratch_operands = 0 : i64, tpu.core_type = #tpu.core_type<tc>, window_params = [{transform_indices = @transform_0, window_bounds = array<i64: 4, 128>}, {pipeline_mode = #tpu.pipeline_mode<synchronous>, transform_indices = @transform_1, window_bounds = array<i64: 128, 4>}, {pipeline_mode = #tpu.pipeline_mode<synchronous>, transform_indices = @transform_2, window_bounds = array<i64: 128, 1>}, {pipeline_mode = #tpu.pipeline_mode<synchronous>, transform_indices = @transform_3, window_bounds = array<i64: 128, 1>}, {transform_indices = @transform_4, window_bounds = array<i64: 1>}, {transform_indices = @transform_5, window_bounds = array<i64: 1, 128>}]} {
    %c0 = arith.constant 0 : index
    %c0_0 = arith.constant 0 : index
    %0 = vector.load %arg1[%c0, %c0_0] : memref<4x128xf32, #tpu.memory_space<vmem>>, vector<4x128xf32>
    %c0_1 = arith.constant 0 : index
    %c0_2 = arith.constant 0 : index
    %1 = vector.load %arg2[%c0_1, %c0_2] : memref<128x4xf32, #tpu.memory_space<vmem>>, vector<128x4xf32>
    %c0_3 = arith.constant 0 : index
    %c0_4 = arith.constant 0 : index
    %2 = vector.load %arg3[%c0_3, %c0_4] : memref<128x1xf32, #tpu.memory_space<vmem>>, vector<128x1xf32>
    %3 = vector.extract_strided_slice %1 {offsets = [0, 0], sizes = [128, 1], strides = [1, 1]} : vector<128x4xf32> to vector<128x1xf32>
    %4 = vector.extract_strided_slice %0 {offsets = [0, 0], sizes = [1, 128], strides = [1, 1]} : vector<4x128xf32> to vector<1x128xf32>
    %5 = vector.broadcast %3 : vector<128x1xf32> to vector<128x128xf32>
    %6 = vector.broadcast %4 : vector<1x128xf32> to vector<128x128xf32>
    %7 = arith.mulf %5, %6 : vector<128x128xf32>
    %8 = vector.broadcast %2 : vector<128x1xf32> to vector<128x128xf32>
    %9 = arith.addf %8, %7 : vector<128x128xf32>
    %10 = vector.extract_strided_slice %1 {offsets = [0, 1], sizes = [128, 1], strides = [1, 1]} : vector<128x4xf32> to vector<128x1xf32>
    %11 = vector.extract_strided_slice %0 {offsets = [1, 0], sizes = [1, 128], strides = [1, 1]} : vector<4x128xf32> to vector<1x128xf32>
    %12 = vector.broadcast %10 : vector<128x1xf32> to vector<128x128xf32>
    %13 = vector.broadcast %11 : vector<1x128xf32> to vector<128x128xf32>
    %14 = arith.mulf %12, %13 : vector<128x128xf32>
    %15 = arith.addf %9, %14 : vector<128x128xf32>
    %16 = vector.extract_strided_slice %1 {offsets = [0, 2], sizes = [128, 1], strides = [1, 1]} : vector<128x4xf32> to vector<128x1xf32>
    %17 = vector.extract_strided_slice %0 {offsets = [2, 0], sizes = [1, 128], strides = [1, 1]} : vector<4x128xf32> to vector<1x128xf32>
    %18 = vector.broadcast %16 : vector<128x1xf32> to vector<128x128xf32>
    %19 = vector.broadcast %17 : vector<1x128xf32> to vector<128x128xf32>
    %20 = arith.mulf %18, %19 : vector<128x128xf32>
    %21 = arith.addf %15, %20 : vector<128x128xf32>
    %22 = vector.extract_strided_slice %1 {offsets = [0, 3], sizes = [128, 1], strides = [1, 1]} : vector<128x4xf32> to vector<128x1xf32>
    %23 = vector.extract_strided_slice %0 {offsets = [3, 0], sizes = [1, 128], strides = [1, 1]} : vector<4x128xf32> to vector<1x128xf32>
    %24 = vector.broadcast %22 : vector<128x1xf32> to vector<128x128xf32>
    %25 = vector.broadcast %23 : vector<1x128xf32> to vector<128x128xf32>
    %26 = arith.mulf %24, %25 : vector<128x128xf32>
    %27 = arith.addf %21, %26 : vector<128x128xf32>
    %cst = arith.constant 0.000000e+00 : f32
    %28 = vector.broadcast %cst : f32 to vector<128x128xf32>
    %29 = arith.maximumf %27, %28 : vector<128x128xf32>
    %c0_5 = arith.constant 0 : index
    %c0_6 = arith.constant 0 : index
    %30 = vector.load %arg4[%c0_5, %c0_6] : memref<128x1xf32, #tpu.memory_space<vmem>>, vector<128x1xf32>
    %31 = vector.broadcast %30 : vector<128x1xf32> to vector<128x128xf32>
    %32 = arith.mulf %29, %31 : vector<128x128xf32>
    %cst_7 = arith.constant dense<0.000000e+00> : vector<128xf32>
    %33 = vector.multi_reduction <add>, %32, %cst_7 [0] : vector<128x128xf32> to vector<128xf32>
    %34 = vector.shape_cast %33 : vector<128xf32> to vector<1x128xf32>
    %c0_8 = arith.constant 0 : index
    %35 = memref.load %arg5[%c0_8] : memref<1xf32, #tpu.memory_space<smem>>
    %36 = vector.broadcast %35 : f32 to vector<1x128xf32>
    %37 = arith.addf %34, %36 : vector<1x128xf32>
    %c0_9 = arith.constant 0 : index
    %c0_10 = arith.constant 0 : index
    %38 = vector.load %arg6[%c0_9, %c0_10] : memref<1x128xf32, #tpu.memory_space<vmem>>, vector<1x128xf32>
    tpu.vector_store %arg6[%c0_9, %c0_10], %37 {strides = array<i32>} : memref<1x128xf32, #tpu.memory_space<vmem>>, vector<1x128xf32>,
    return
  }
  func.func @transform_0(%arg0: i32) -> (i32, i32) {
    %c0_i32 = arith.constant 0 : i32
    %c0_i32_0 = arith.constant 0 : i32
    return %c0_i32, %arg0 : i32, i32
  }
  func.func @transform_1(%arg0: i32) -> (i32, i32) {
    %c0_i32 = arith.constant 0 : i32
    %c0_i32_0 = arith.constant 0 : i32
    %c0_i32_1 = arith.constant 0 : i32
    return %c0_i32, %c0_i32_0 : i32, i32
  }
  func.func @transform_2(%arg0: i32) -> (i32, i32) {
    %c0_i32 = arith.constant 0 : i32
    %c0_i32_0 = arith.constant 0 : i32
    %c0_i32_1 = arith.constant 0 : i32
    return %c0_i32, %c0_i32_0 : i32, i32
  }
  func.func @transform_3(%arg0: i32) -> (i32, i32) {
    %c0_i32 = arith.constant 0 : i32
    %c0_i32_0 = arith.constant 0 : i32
    %c0_i32_1 = arith.constant 0 : i32
    return %c0_i32, %c0_i32_0 : i32, i32
  }
  func.func @transform_4(%arg0: i32) -> i32 {
    %c0_i32 = arith.constant 0 : i32
    %c0_i32_0 = arith.constant 0 : i32
    return %c0_i32 : i32
  }
  func.func @transform_5(%arg0: i32) -> (i32, i32) {
    %c0_i32 = arith.constant 0 : i32
    %c0_i32_0 = arith.constant 0 : i32
    return %c0_i32, %arg0 : i32, i32
  }
}

</mosaic_0001>

<bundles_post_ra>
// kernel: tpu_custom_call.1
= control target key start
LH: loop header
LB: loop body
LE: loop exit
PB: predicated region body
PF: predicated region fallthrough
CT: control target
= control target key end

     0   :  { %v753_v3 = vmov 1   ;;  %v754_v4 = vmov 0   ;;  %s1285_s0 = inlined_call_operand.vmem [shape: f32[4,128], index: 0, kind: input, shape index: {}]   ;;  %s1286_s1 = inlined_call_operand.vmem [shape: f32[128,4], index: 1, kind: input, shape index: {}]   ;;  %s1287_s2 = inlined_call_operand.vmem [shape: f32[128,1], index: 2, kind: input, shape index: {}]   ;;  %s1288_s3 = inlined_call_operand.vmem [shape: f32[128,1], index: 3, kind: input, shape index: {}]   ;;  %s1289_s4 = inlined_call_operand.<no memory space> [shape: f32[1], index: 4, kind: input, shape index: {}]   ;;  %s1290_s5 = inlined_call_operand.hbm [shape: f32[1,128], index: 5, kind: output, shape index: {}]  }
   0x1   :  { %v791_v0 = vld [vmem:[%s1286_s1 + $0x20] sm:$0xff]  ;;  %v796_v1 = vld [vmem:[%s1286_s1 + $0x10] sm:$0xff]  ;;  %v801_v2 = vld [vmem:[%s1286_s1 + $0x8] sm:$0xff]  ;;  %716 = vset.pattern.permute.xlu0 %v753_v3  ;;  %714 = vset.pattern.permute.xlu2 %v754_v4 }
   0x2   :  { %713 = vset.pattern.permute.xlu1 %v754_v4  ;;  %77 = vperm.xlu2 %714, %v791_v0  }
   0x3   :  { %67 = vperm.xlu1 %713, %v796_v1   ;;  %253 = vperm.xlu0 %716, %v801_v2  }
   0x4   :  { %11 = vsyncpa [#allocation4], 0  ;;  %v812_v5 = vld [vmem:[%s1286_s1 + $0x28] sm:$0xff]  ;;  %v817_v6 = vld [vmem:[%s1286_s1 + $0x18] sm:$0xff]  ;;  %v755_v19 = vmov 2   ;;  %v756_v29 = vmov 3  }
   0x5   :  { %v822_v7 = vld [vmem:[%s1286_s1 + $0x30] sm:$0xff]  ;;  %v830_v8 = vld [vmem:[%s1286_s1 + $0x40] sm:$0xff]  ;;  %v835_v9 = vld [vmem:[%s1286_s1 + $0x38] sm:$0xff]  ;;  %s757_s11 = smov [#allocation3]   ;;  %s699_s15 = sshll.u32 %s1290_s5, 4  ;;  %s700_s15 = int_to_ptr.hbm [resolvable:$true] %s699_s15 }
   0x6   :  { %v840_v10 = vld [vmem:[%s1286_s1 + $0x48] sm:$0xff]  ;;  %v848_v11 = vld [vmem:[%s1286_s1 + $0x58] sm:$0xff]  ;;  %v853_v12 = vld [vmem:[%s1286_s1 + $0x50] sm:$0xff]  ;;  %s697_s12 = sshll.u32 %s757_s11, 4  ;;  %s698_s12 = int_to_ptr.vmem [resolvable:$true] %s697_s12 }
   0x7   :  { %v858_v13 = vld [vmem:[%s1286_s1 + $0x60] sm:$0xff]  ;;  %v866_v14 = vld [vmem:[%s1286_s1 + $0x70] sm:$0xff]  ;;  %v871_v15 = vld [vmem:[%s1286_s1 + $0x68] sm:$0xff] }
   0x8   :  { %v876_v16 = vld [vmem:[%s1286_s1 + $0x78] sm:$0xff]  ;;  %v40_v17 = vld [vmem:[%s1287_s2 + $0x8] sm:$0xff]  ;;  %v39_v18 = vld [vmem:[%s1287_s2] sm:$0xff] }
   0x9   :  { %v43_v20 = vld [vmem:[%s1287_s2 + $0x20] sm:$0xff]  ;;  %v42_v21 = vld [vmem:[%s1287_s2 + $0x18] sm:$0xff]  ;;  %v45_v23 = vld [vmem:[%s1287_s2 + $0x30] sm:$0xff] }
   0xa   :  { %82 = vperm.xlu2 %714, %v812_v5   ;;  %v46_v22 = vld [vmem:[%s1287_s2 + $0x38] sm:$0xff]  ;;  %v49_v24 = vld [vmem:[%s1287_s2 + $0x50] sm:$0xff]  ;;  %v48_v25 = vld [vmem:[%s1287_s2 + $0x48] sm:$0xff] }
   0xb   :  { %72 = vperm.xlu1 %713, %v817_v6   ;;  %273 = vperm.xlu0 %716, %v822_v7   ;;  %v52_v26 = vld [vmem:[%s1287_s2 + $0x68] sm:$0xff]  ;;  %v51_v27 = vld [vmem:[%s1287_s2 + $0x60] sm:$0xff]  ;;  %v54_v30 = vld [vmem:[%s1287_s2 + $0x78] sm:$0xff] }
   0xc   :  { %v23_v28 = vld [vmem:[%s1286_s1] sm:$0xff]  ;;  %v41_v61 = vld [vmem:[%s1287_s2 + $0x10] sm:$0xff] }
   0xd   :  { %v962_v43 = vld [vmem:[%s1285_s0] sm:$0xf] }
   0xe   :  { %v966_v44 = vperm.slane %v962_v43, 0 }
  0x12   :  { %97 = vperm.xlu2 %714, %v830_v8  }
  0x13   :  { %92 = vperm.xlu1 %713, %v835_v9   ;;  %285 = vperm.xlu0 %716, %v840_v10  }
  0x1a   :  { %112 = vperm.xlu2 %714, %v848_v11  }
  0x1b   :  { %107 = vperm.xlu1 %713, %v853_v12   ;;  %297 = vperm.xlu0 %716, %v858_v13  }
  0x22   :  { %127 = vperm.xlu2 %714, %v866_v14  }
  0x23   :  { %122 = vperm.xlu1 %713, %v871_v15   ;;  %309 = vperm.xlu0 %716, %v876_v16  }
  0x2a   :  { %159 = vperm.xlu2 %714, %v40_v17  }
  0x2b   :  { %154 = vperm.xlu1 %713, %v39_v18   ;;  %720 = vset.pattern.permute.xlu0 %v755_v19  ;;  %v44_v18 = vld [vmem:[%s1287_s2 + $0x28] sm:$0xff] }
  0x2c   :  { %354 = vperm.xlu0 %720, %v796_v1  }
  0x32   :  { %174 = vperm.xlu2 %714, %v43_v20  }
  0x33   :  { %169 = vperm.xlu1 %713, %v42_v21  }
  0x34   :  { %374 = vperm.xlu0 %720, %v835_v9  }
  0x3a   :  { %189 = vperm.xlu2 %714, %v46_v22   ;;  %v1018_v22 = vperm.slane %v962_v43, 1 }
  0x3b   :  { %184 = vperm.xlu1 %713, %v45_v23  }
  0x3c   :  { %386 = vperm.xlu0 %720, %v853_v12  }
  0x42   :  { %204 = vperm.xlu2 %714, %v49_v24  }
  0x43   :  { %199 = vperm.xlu1 %713, %v48_v25  }
  0x44   :  { %398 = vperm.xlu0 %720, %v871_v15  }
  0x4a   :  { %219 = vperm.xlu2 %714, %v52_v26  }
  0x4b   :  { %214 = vperm.xlu1 %713, %v51_v27   ;;  %v50_v27 = vld [vmem:[%s1287_s2 + $0x58] sm:$0xff] }
  0x4c   :  { %721 = vset.pattern.permute.xlu0 %v756_v29 }
  0x4d   :  { %443 = vperm.xlu0 %721, %v23_v28  }
  0x52   :  { %715 = vset.pattern.permute.xlu2 %v753_v3 }
  0x53   :  { %229 = vperm.xlu1 %713, %v54_v30   ;;  %249 = vperm.xlu2 %715, %v23_v28  }
  0x55   :  { %463 = vperm.xlu0 %721, %v812_v5  }
  0x5b   :  { %717 = vset.pattern.permute.xlu1 %v753_v3  ;;  %261 = vperm.xlu2 %715, %v817_v6  }
  0x5c   :  { %257 = vperm.xlu1 %717, %v796_v1   ;;  %v78_v31 = vpop.permute.xlu2 %77 }
  0x5d   :  { %475 = vperm.xlu0 %721, %v830_v8   ;;  %v140_v45 = vmul.f32 %v966_v44, %v78_v31 }
  0x63   :  { %269 = vperm.xlu2 %715, %v812_v5  }
  0x64   :  { %265 = vperm.xlu1 %717, %v791_v0   ;;  %v930_v32 = vpop.permute.xlu2 %82 }
  0x65   :  { %487 = vperm.xlu0 %721, %v848_v11  }
  0x6b   :  { %281 = vperm.xlu2 %715, %v830_v8  }
  0x6c   :  { %277 = vperm.xlu1 %717, %v835_v9   ;;  %v935_v33 = vpop.permute.xlu2 %97 }
  0x6d   :  { %499 = vperm.xlu0 %721, %v866_v14  }
  0x73   :  { %293 = vperm.xlu2 %715, %v848_v11  }
  0x74   :  { %289 = vperm.xlu1 %717, %v853_v12   ;;  %v940_v34 = vpop.permute.xlu2 %112 }
  0x75   :  { %v942_v35 = vpop.permute.xlu1 %67  ;;  %v944_v36 = vpop.permute.xlu0 %253  ;;  %724 = vset.pattern.permute.xlu0 %v754_v4 }
  0x76   :  { %57 = vperm.xlu0 %724, %v23_v28  }
  0x7b   :  { %305 = vperm.xlu2 %715, %v866_v14  }
  0x7c   :  { %301 = vperm.xlu1 %717, %v871_v15   ;;  %v949_v37 = vpop.permute.xlu2 %127 }
  0x7d   :  { %v73_v38 = vpop.permute.xlu1 %72  ;;  %v951_v39 = vpop.permute.xlu0 %273 }
  0x7e   :  { %62 = vperm.xlu0 %724, %v801_v2   ;;  %v139_v62 = vmul.f32 %v966_v44, %v73_v38 }
  0x83   :  { %719 = vset.pattern.permute.xlu2 %v755_v19 }
  0x84   :  { %718 = vset.pattern.permute.xlu1 %v755_v19  ;;  %v954_v40 = vpop.permute.xlu2 %159  ;;  %350 = vperm.xlu2 %719, %v801_v2  }
  0x85   :  { %v93_v41 = vpop.permute.xlu1 %92  ;;  %v957_v42 = vpop.permute.xlu0 %285  ;;  %346 = vperm.xlu1 %718, %v23_v28  }
  0x86   :  { %87 = vperm.xlu0 %724, %v822_v7   ;;  %v143_v50 = vmul.f32 %v966_v44, %v93_v41 }
  0x8c   :  { %v175_v46 = vpop.permute.xlu2 %174  ;;  %362 = vperm.xlu2 %719, %v791_v0  }
  0x8d   :  { %v970_v47 = vadd.f32 %v175_v46, %v140_v45  ;;  %v108_v48 = vpop.permute.xlu1 %107  ;;  %v972_v49 = vpop.permute.xlu0 %297  ;;  %358 = vperm.xlu1 %718, %v817_v6  }
  0x8e   :  { %102 = vperm.xlu0 %724, %v840_v10   ;;  %v146_v55 = vmul.f32 %v966_v44, %v108_v48 }
  0x94   :  { %v190_v51 = vpop.permute.xlu2 %189  ;;  %370 = vperm.xlu2 %719, %v822_v7  }
  0x95   :  { %v978_v52 = vadd.f32 %v190_v51, %v143_v50  ;;  %v123_v53 = vpop.permute.xlu1 %122  ;;  %366 = vperm.xlu1 %718, %v812_v5   ;;  %v981_v54 = vpop.permute.xlu0 %309  ;;  %v564_v50 = vld [vmem:[%s1288_s3 + $0x48] sm:$0xff]  ;;  %v1082_v51 = vperm.slane %v962_v43, 2 }
  0x96   :  { %117 = vperm.xlu0 %724, %v858_v13   ;;  %v149_v60 = vmul.f32 %v966_v44, %v123_v53 }
  0x9c   :  { %v205_v56 = vpop.permute.xlu2 %204  ;;  %382 = vperm.xlu2 %719, %v840_v10  }
  0x9d   :  { %v986_v57 = vadd.f32 %v205_v56, %v146_v55  ;;  %v988_v58 = vpop.permute.xlu1 %154  ;;  %378 = vperm.xlu1 %718, %v830_v8  }
  0x9e   :  { %132 = vperm.xlu0 %724, %v876_v16   ;;  %v992_v59 = vpop.permute.xlu0 %354 }
  0xa4   :  { %v220_v63 = vpop.permute.xlu2 %219  ;;  %394 = vperm.xlu2 %719, %v858_v13  }
  0xa5   :  { %v1000_v3 = vadd.f32 %v220_v63, %v149_v60  ;;  %v170_v5 = vpop.permute.xlu1 %169  ;;  %390 = vperm.xlu1 %718, %v848_v11   ;;  %v47_v11 = vld [vmem:[%s1287_s2 + $0x40] sm:$0xff]  ;;  %v558_v63 = vld [vmem:[%s1288_s3 + $0x18] sm:$0xff] }
  0xa6   :  { %v235_v8 = vadd.f32 %v170_v5, %v139_v62  ;;  %164 = vperm.xlu0 %724, %v41_v61   ;;  %v375_v17 = vpop.permute.xlu0 %374  ;;  %v567_v61 = vld [vmem:[%s1288_s3 + $0x60] sm:$0xff] }
  0xa7   :  { %v417_v56 = vmul.f32 %v1082_v51, %v375_v17 }
  0xac   :  { %406 = vperm.xlu2 %719, %v876_v16  }
  0xad   :  { %v1007_v19 = vpop.permute.xlu1 %184  ;;  %402 = vperm.xlu1 %718, %v866_v14   ;;  %v1010_v20 = vpop.permute.xlu2 %249 }
  0xae   :  { %179 = vperm.xlu0 %724, %v44_v18   ;;  %v1012_v21 = vpop.permute.xlu0 %386 }
  0xb4   :  { %723 = vset.pattern.permute.xlu2 %v756_v29 }
  0xb5   :  { %v1021_v23 = vpop.permute.xlu1 %199  ;;  %722 = vset.pattern.permute.xlu1 %v756_v29  ;;  %451 = vperm.xlu2 %723, %v796_v1   ;;  %v262_v14 = vpop.permute.xlu2 %261 }
  0xb6   :  { %194 = vperm.xlu0 %724, %v47_v11   ;;  %447 = vperm.xlu1 %722, %v801_v2   ;;  %v316_v24 = vmul.f32 %v1018_v22, %v262_v14  ;;  %v1027_v25 = vpop.permute.xlu0 %398  ;;  %v53_v2 = vld [vmem:[%s1287_s2 + $0x70] sm:$0xff]  ;;  %v420_v11 = vmul.f32 %v1082_v51, %v1012_v21  ;;  %v559_v21 = vld [vmem:[%s1288_s3 + $0x20] sm:$0xff] }
  0xb8   :  { %v1029_v26 = vadd.f32 %v316_v24, %v235_v8 }
  0xbd   :  { %v1034_v28 = vpop.permute.xlu1 %214  ;;  %459 = vperm.xlu2 %723, %v791_v0   ;;  %v1037_v29 = vpop.permute.xlu2 %269 }
  0xbe   :  { %209 = vperm.xlu0 %724, %v50_v27   ;;  %455 = vperm.xlu1 %722, %v817_v6   ;;  %v556_v6 = vld [vmem:[%s1288_s3 + $0x8] sm:$0xff] }
  0xbf   :  { %v1040_v1 = vpop.permute.xlu0 %443 }
  0xc5   :  { %v1045_v30 = vpop.permute.xlu1 %229  ;;  %471 = vperm.xlu2 %723, %v835_v9   ;;  %v1048_v31 = vpop.permute.xlu2 %281 }
  0xc6   :  { %224 = vperm.xlu0 %724, %v53_v2   ;;  %467 = vperm.xlu1 %722, %v822_v7   ;;  %v561_v7 = vld [vmem:[%s1288_s3 + $0x30] sm:$0xff] }
  0xc7   :  { %v1051_v0 = vpop.permute.xlu0 %463 }
  0xcd   :  { %483 = vperm.xlu2 %723, %v853_v12   ;;  %v1057_v38 = vpop.permute.xlu2 %293 }
  0xce   :  { %v1059_v41 = vpop.permute.xlu1 %257  ;;  %578 = vperm.xlu0 %724, %v556_v6   ;;  %479 = vperm.xlu1 %722, %v840_v10   ;;  %v570_v6 = vld [vmem:[%s1288_s3 + $0x78] sm:$0xff] }
  0xcf   :  { %v1062_v9 = vpop.permute.xlu0 %475 }
  0xd5   :  { %495 = vperm.xlu2 %723, %v871_v15   ;;  %v1068_v45 = vpop.permute.xlu2 %305  ;;  %v555_v15 = vld [vmem:[%s1288_s3] sm:$0xff] }
  0xd6   :  { %v266_v46 = vpop.permute.xlu1 %265  ;;  %603 = vperm.xlu0 %724, %v561_v7   ;;  %491 = vperm.xlu1 %722, %v858_v13  }
  0xd7   :  { %v317_v12 = vmul.f32 %v1018_v22, %v266_v46  ;;  %v1072_v48 = vpop.permute.xlu0 %487 }
  0xd9   :  { %v333_v10 = vadd.f32 %v317_v12, %v970_v47 }
  0xdd   :  { %725 = vset.pattern.permute.xlu2 %v754_v4 }
  0xde   :  { %v278_v13 = vpop.permute.xlu1 %277  ;;  %618 = vperm.xlu0 %724, %v564_v50   ;;  %503 = vperm.xlu1 %722, %v876_v16   ;;  %v351_v53 = vpop.permute.xlu2 %350  ;;  %v557_v16 = vld [vmem:[%s1288_s3 + $0x10] sm:$0xff]  ;;  %v423_v50 = vmul.f32 %v1082_v51, %v1027_v25  ;;  %v563_v25 = vld [vmem:[%s1288_s3 + $0x40] sm:$0xff] }
  0xdf   :  { %v320_v47 = vmul.f32 %v1018_v22, %v278_v13  ;;  %v1087_v55 = vpop.permute.xlu0 %499  ;;  %573 = vperm.xlu2 %725, %v555_v15  }
  0xe1   :  { %v336_v60 = vadd.f32 %v320_v47, %v978_v52  ;;  %v314_v47 = vmul.f32 %v1018_v22, %v944_v36 }
  0xe3   :  { %v1094_v62 = vadd.f32 %v417_v56, %v336_v60  ;;  %v411_v56 = vmul.f32 %v1082_v51, %v351_v53 }
  0xe6   :  { %v290_v5 = vpop.permute.xlu1 %289  ;;  %633 = vperm.xlu0 %724, %v567_v61   ;;  %726 = vset.pattern.permute.xlu1 %v754_v4  ;;  %v363_v8 = vpop.permute.xlu2 %362  ;;  %v313_v4 = vmul.f32 %v1018_v22, %v1010_v20 }
  0xe7   :  { %v323_v52 = vmul.f32 %v1018_v22, %v290_v5  ;;  %583 = vperm.xlu1 %726, %v557_v16   ;;  %588 = vperm.xlu2 %725, %v558_v63   ;;  %v414_v17 = vmul.f32 %v1082_v51, %v363_v8  ;;  %v562_v16 = vld [vmem:[%s1288_s3 + $0x38] sm:$0xff]  ;;  %v1143_v63 = vperm.slane %v962_v43, 3 }
  0xe8   :  { %v58_v18 = vpop.permute.xlu0 %57 }
  0xe9   :  { %v339_v14 = vadd.f32 %v323_v52, %v986_v57  ;;  %v1108_v24 = vadd.f32 %v414_v17, %v333_v10  ;;  %v136_v27 = vmul.f32 %v966_v44, %v58_v18  ;;  %v560_v57 = vld [vmem:[%s1288_s3 + $0x28] sm:$0xff]  ;;  %v507_v17 = vmul.f32 %v1143_v63, %v1040_v1 }
  0xeb   :  { %v232_v2 = vadd.f32 %v988_v58, %v136_v27  ;;  %v1117_v7 = vadd.f32 %v420_v11, %v339_v14  ;;  %v319_v11 = vmul.f32 %v1018_v22, %v951_v39  ;;  %v565_v14 = vld [vmem:[%s1288_s3 + $0x50] sm:$0xff]  ;;  %v566_v27 = vld [vmem:[%s1288_s3 + $0x58] sm:$0xff] }
  0xed   :  { %v329_v46 = vadd.f32 %v313_v4, %v232_v2 }
  0xee   :  { %v302_v12 = vpop.permute.xlu1 %301  ;;  %648 = vperm.xlu0 %724, %v570_v6   ;;  %v371_v20 = vpop.permute.xlu2 %370 }
  0xef   :  { %v326_v58 = vmul.f32 %v1018_v22, %v302_v12  ;;  %593 = vperm.xlu1 %726, %v559_v21   ;;  %598 = vperm.xlu2 %725, %v560_v57   ;;  %v416_v2 = vmul.f32 %v1082_v51, %v371_v20 }
  0xf0   :  { %v63_v10 = vpop.permute.xlu0 %62 }
  0xf1   :  { %v342_v15 = vadd.f32 %v326_v58, %v1000_v3  ;;  %v137_v13 = vmul.f32 %v966_v44, %v63_v10  ;;  %v322_v58 = vmul.f32 %v1018_v22, %v957_v42  ;;  %v568_v10 = vld [vmem:[%s1288_s3 + $0x68] sm:$0xff] }
  0xf3   :  { %v233_v60 = vadd.f32 %v954_v40, %v137_v13  ;;  %v1134_v61 = vadd.f32 %v423_v50, %v342_v15  ;;  %v569_v50 = vld [vmem:[%s1288_s3 + $0x70] sm:$0xff] }
  0xf5   :  { %v330_v3 = vadd.f32 %v314_v47, %v233_v60  ;;  %v325_v60 = vmul.f32 %v1018_v22, %v972_v49 }
  0xf6   :  { %v383_v5 = vpop.permute.xlu2 %382 }
  0xf7   :  { %608 = vperm.xlu1 %726, %v562_v16   ;;  %v347_v36 = vpop.permute.xlu1 %346  ;;  %613 = vperm.xlu2 %725, %v563_v25   ;;  %v1145_v53 = vadd.f32 %v411_v56, %v330_v3  ;;  %v419_v15 = vmul.f32 %v1082_v51, %v383_v5 }
  0xf8   :  { %v410_v40 = vmul.f32 %v1082_v51, %v347_v36  ;;  %v88_v8 = vpop.permute.xlu0 %87 }
  0xf9   :  { %v142_v52 = vmul.f32 %v966_v44, %v88_v8 }
  0xfa   :  { %v426_v18 = vadd.f32 %v410_v40, %v329_v46 }
  0xfb   :  { %v238_v43 = vadd.f32 %v1007_v19, %v142_v52 }
  0xfc   :  { %v1160_v4 = vadd.f32 %v507_v17, %v426_v18  ;;  %v328_v17 = vmul.f32 %v1018_v22, %v981_v54  ;;  %v412_v54 = vmul.f32 %v1082_v51, %v992_v59 }
  0xfd   :  { %v335_v6 = vadd.f32 %v319_v11, %v238_v43 }
  0xfe   :  { %v395_v1 = vpop.permute.xlu2 %394 }
  0xff   :  { %623 = vperm.xlu1 %726, %v565_v14   ;;  %v359_v21 = vpop.permute.xlu1 %358  ;;  %628 = vperm.xlu2 %725, %v566_v27   ;;  %v1163_v39 = vadd.f32 %v416_v2, %v335_v6  ;;  %v422_v25 = vmul.f32 %v1082_v51, %v395_v1  ;;  %v315_v6 = vmul.f32 %v1018_v22, %v1059_v41 }
 0x100   :  { %v413_v19 = vmul.f32 %v1082_v51, %v359_v21  ;;  %v103_v57 = vpop.permute.xlu0 %102 }
 0x101   :  { %v145_v46 = vmul.f32 %v966_v44, %v103_v57 }
 0x102   :  { %v1168_v12 = vadd.f32 %v413_v19, %v1029_v26  ;;  %v141_v19 = vmul.f32 %v966_v44, %v930_v32 }
 0x103   :  { %v241_v20 = vadd.f32 %v1021_v23, %v145_v46 }
 0x105   :  { %v338_v13 = vadd.f32 %v322_v58, %v241_v20  ;;  %v318_v58 = vmul.f32 %v1018_v22, %v1037_v29 }
 0x106   :  { %v407_v47 = vpop.permute.xlu2 %406 }
 0x107   :  { %638 = vperm.xlu1 %726, %v568_v10   ;;  %v367_v26 = vpop.permute.xlu1 %366  ;;  %643 = vperm.xlu2 %725, %v569_v50   ;;  %v1180_v56 = vadd.f32 %v419_v15, %v338_v13  ;;  %v425_v49 = vmul.f32 %v1082_v51, %v407_v47  ;;  %v512_v50 = vmul.f32 %v1143_v63, %v1051_v0 }
 0x108   :  { %v118_v42 = vpop.permute.xlu0 %117  ;;  %v415_v10 = vmul.f32 %v1082_v51, %v367_v26  ;;  %v144_v15 = vmul.f32 %v966_v44, %v935_v33  ;;  %v515_v0 = vmul.f32 %v1143_v63, %v1062_v9  ;;  %v147_v33 = vmul.f32 %v966_v44, %v940_v34 }
 0x109   :  { %v148_v23 = vmul.f32 %v966_v44, %v118_v42  ;;  %v321_v42 = vmul.f32 %v1018_v22, %v1048_v31  ;;  %v324_v31 = vmul.f32 %v1018_v22, %v1057_v38  ;;  %v518_v9 = vmul.f32 %v1143_v63, %v1072_v48 }
 0x10a   :  { %v150_v34 = vmul.f32 %v966_v44, %v949_v37  ;;  %v327_v38 = vmul.f32 %v1018_v22, %v1068_v45  ;;  %v521_v48 = vmul.f32 %v1143_v63, %v1087_v55 }
 0x10b   :  { %v244_v16 = vadd.f32 %v1034_v28, %v148_v23  ;;  %v138_v28 = vmul.f32 %v966_v44, %v942_v35 }
 0x10d   :  { %v341_v3 = vadd.f32 %v325_v60, %v244_v16 }
 0x10f   :  { %v379_v36 = vpop.permute.xlu1 %378  ;;  %v1187_v5 = vpop.permute.xlu2 %451  ;;  %v1189_v40 = vadd.f32 %v422_v25, %v341_v3 }
 0x110   :  { %v133_v8 = vpop.permute.xlu0 %132  ;;  %v418_v26 = vmul.f32 %v1082_v51, %v379_v36 }
 0x111   :  { %v151_v52 = vmul.f32 %v966_v44, %v133_v8  ;;  %v539_v44 = vmax.f32 %v1160_v4, 0.0 }
 0x113   :  { %v247_v18 = vadd.f32 %v1045_v30, %v151_v52 }
 0x115   :  { %v344_v11 = vadd.f32 %v328_v17, %v247_v18 }
 0x117   :  { %v391_v43 = vpop.permute.xlu1 %390  ;;  %v1198_v14 = vpop.permute.xlu2 %459  ;;  %v1200_v27 = vadd.f32 %v425_v49, %v344_v11 }
 0x118   :  { %v165_v2 = vpop.permute.xlu0 %164  ;;  %v421_v17 = vmul.f32 %v1082_v51, %v391_v43  ;;  %v511_v4 = vmul.f32 %v1143_v63, %v1198_v14 }
 0x119   :  { %v234_v1 = vadd.f32 %v165_v2, %v138_v28 }
 0x11b   :  { %v331_v30 = vadd.f32 %v315_v6, %v234_v1 }
 0x11d   :  { %v428_v21 = vadd.f32 %v412_v54, %v331_v30 }
 0x11f   :  { %v403_v57 = vpop.permute.xlu1 %402  ;;  %v1208_v46 = vpop.permute.xlu2 %471 }
 0x120   :  { %v180_v35 = vpop.permute.xlu0 %179  ;;  %v424_v1 = vmul.f32 %v1082_v51, %v403_v57  ;;  %v509_v51 = vmul.f32 %v1143_v63, %v1187_v5 }
 0x121   :  { %v237_v20 = vadd.f32 %v180_v35, %v141_v19 }
 0x123   :  { %v334_v41 = vadd.f32 %v318_v58, %v237_v20 }
 0x125   :  { %v431_v59 = vadd.f32 %v415_v10, %v334_v41 }
 0x127   :  { %v1217_v13 = vadd.f32 %v512_v50, %v431_v59  ;;  %v1221_v29 = vpop.permute.xlu2 %483  ;;  %v525_v59 = vadd.f32 %v509_v51, %v428_v21  ;;  %v514_v21 = vmul.f32 %v1143_v63, %v1208_v46 }
 0x128   :  { %v195_v32 = vpop.permute.xlu0 %194  ;;  %v448_v47 = vpop.permute.xlu1 %447  ;;  %v517_v46 = vmul.f32 %v1143_v63, %v1221_v29 }
 0x129   :  { %v240_v23 = vadd.f32 %v195_v32, %v144_v15  ;;  %v508_v11 = vmul.f32 %v1143_v63, %v448_v47  ;;  %v541_v32 = vmax.f32 %v525_v59, 0.0 }
 0x12b   :  { %v337_v60 = vadd.f32 %v321_v42, %v240_v23  ;;  %v524_v54 = vadd.f32 %v508_v11, %v1145_v53 }
 0x12d   :  { %v434_v16 = vadd.f32 %v418_v26, %v337_v60  ;;  %v540_v35 = vmax.f32 %v524_v54, 0.0  ;;  %v527_v60 = vadd.f32 %v511_v4, %v1108_v24  ;;  %v533_v54 = vadd.f32 %v517_v46, %v1117_v7 }
 0x12f   :  { %v1228_v25 = vadd.f32 %v515_v0, %v434_v16  ;;  %v1233_v36 = vpop.permute.xlu2 %495 }
 0x130   :  { %v210_v3 = vpop.permute.xlu0 %209  ;;  %v456_v8 = vpop.permute.xlu1 %455  ;;  %v520_v29 = vmul.f32 %v1143_v63, %v1233_v36 }
 0x131   :  { %v243_v52 = vadd.f32 %v210_v3, %v147_v33  ;;  %v510_v55 = vmul.f32 %v1143_v63, %v456_v8  ;;  %v543_v8 = vmax.f32 %v527_v60, 0.0 }
 0x133   :  { %v340_v18 = vadd.f32 %v324_v31, %v243_v52  ;;  %v526_v15 = vadd.f32 %v510_v55, %v1168_v12  ;;  %v544_v31 = vmax.f32 %v1217_v13, 0.0 }
 0x135   :  { %v437_v49 = vadd.f32 %v421_v17, %v340_v18  ;;  %v542_v42 = vmax.f32 %v526_v15, 0.0  ;;  %v530_v17 = vadd.f32 %v514_v21, %v1094_v62 }
 0x137   :  { %v1240_v28 = vadd.f32 %v518_v9, %v437_v49 }
 0x138   :  { %v225_v2 = vpop.permute.xlu0 %224  ;;  %v468_v6 = vpop.permute.xlu1 %467 }
 0x139   :  { %v246_v43 = vadd.f32 %v225_v2, %v150_v34  ;;  %v574_v37 = vpop.permute.xlu2 %573  ;;  %v513_v0 = vmul.f32 %v1143_v63, %v468_v6 }
 0x13a   :  { %v651_v41 = vmul.f32 %v574_v37, %v539_v44 }
 0x13b   :  { %v343_v30 = vadd.f32 %v327_v38, %v246_v43  ;;  %v529_v12 = vadd.f32 %v513_v0, %v1163_v39  ;;  %v546_v38 = vmax.f32 %v530_v17, 0.0 }
 0x13d   :  { %v440_v19 = vadd.f32 %v424_v1, %v343_v30  ;;  %v545_v18 = vmax.f32 %v529_v12, 0.0  ;;  %v547_v1 = vmax.f32 %v1228_v25, 0.0 }
 0x13f   :  { %v1249_v58 = vadd.f32 %v521_v48, %v440_v19 }
 0x140   :  { %v579_v20 = vpop.permute.xlu0 %578  ;;  %v480_v10 = vpop.permute.xlu1 %479 }
 0x141   :  { %v652_v22 = vmul.f32 %v579_v20, %v540_v35  ;;  %v589_v57 = vpop.permute.xlu2 %588  ;;  %v516_v24 = vmul.f32 %v1143_v63, %v480_v10  ;;  %v549_v10 = vmax.f32 %v533_v54, 0.0 }
 0x142   :  { %v654_v5 = vmul.f32 %v589_v57, %v542_v42 }
 0x143   :  { %v667_v45 = vadd.f32 %v652_v22, %v651_v41  ;;  %v532_v39 = vadd.f32 %v516_v24, %v1180_v56 }
 0x145   :  { %v548_v48 = vmax.f32 %v532_v39, 0.0 }
 0x148   :  { %v492_v50 = vpop.permute.xlu1 %491  ;;  %v604_v33 = vpop.permute.xlu0 %603 }
 0x149   :  { %v599_v26 = vpop.permute.xlu2 %598  ;;  %v657_v11 = vmul.f32 %v604_v33, %v545_v18  ;;  %v519_v30 = vmul.f32 %v1143_v63, %v492_v50  ;;  %v536_v50 = vadd.f32 %v520_v29, %v1134_v61 }
 0x14a   :  { %v656_v9 = vmul.f32 %v599_v26, %v544_v31 }
 0x14b   :  { %v535_v56 = vadd.f32 %v519_v30, %v1189_v40 }
 0x14d   :  { %v551_v57 = vmax.f32 %v535_v56, 0.0 }
 0x150   :  { %v504_v53 = vpop.permute.xlu1 %503  ;;  %v619_v6 = vpop.permute.xlu0 %618 }
 0x151   :  { %v614_v34 = vpop.permute.xlu2 %613  ;;  %v660_v44 = vmul.f32 %v619_v6, %v548_v48  ;;  %v522_v51 = vmul.f32 %v1143_v63, %v504_v53 }
 0x152   :  { %v659_v19 = vmul.f32 %v614_v34, %v547_v1 }
 0x153   :  { %v538_v36 = vadd.f32 %v522_v51, %v1200_v27  ;;  %v689_v27 = vstv %s1289_s4 }
 0x155   :  { %v554_v60 = vmax.f32 %v538_v36, 0.0 }
 0x158   :  { %v634_v22 = vpop.permute.xlu0 %633 }
 0x159   :  { %v584_v47 = vpop.permute.xlu1 %583  ;;  %v629_v20 = vpop.permute.xlu2 %628  ;;  %v663_v15 = vmul.f32 %v634_v22, %v551_v57 }
 0x15a   :  { %v653_v23 = vmul.f32 %v584_v47, %v541_v32  ;;  %v552_v32 = vmax.f32 %v536_v50, 0.0 }
 0x15c   :  { %v668_v16 = vadd.f32 %v667_v45, %v653_v23  ;;  %v550_v45 = vmax.f32 %v1240_v28, 0.0  ;;  %v553_v23 = vmax.f32 %v1249_v58, 0.0 }
 0x15e   :  { %v669_v3 = vadd.f32 %v668_v16, %v654_v5  ;;  %v662_v55 = vmul.f32 %v629_v20, %v550_v45 }
 0x160   :  { %v649_v28 = vpop.permute.xlu0 %648 }
 0x161   :  { %v594_v14 = vpop.permute.xlu1 %593  ;;  %v644_v47 = vpop.permute.xlu2 %643  ;;  %v666_v5 = vmul.f32 %v649_v28, %v554_v60 }
 0x162   :  { %v655_v52 = vmul.f32 %v594_v14, %v543_v8  ;;  %v665_v0 = vmul.f32 %v644_v47, %v553_v23 }
 0x164   :  { %v670_v49 = vadd.f32 %v669_v3, %v655_v52 }
 0x166   :  { %v671_v2 = vadd.f32 %v670_v49, %v656_v9 }
 0x168   :  { %v672_v43 = vadd.f32 %v671_v2, %v657_v11 }
 0x169   :  { %v609_v13 = vpop.permute.xlu1 %608 }
 0x16a   :  { %v658_v62 = vmul.f32 %v609_v13, %v546_v38 }
 0x16c   :  { %v673_v37 = vadd.f32 %v672_v43, %v658_v62 }
 0x16e   :  { %v674_v35 = vadd.f32 %v673_v37, %v659_v19 }
 0x170   :  { %v675_v41 = vadd.f32 %v674_v35, %v660_v44 }
 0x171   :  { %v624_v25 = vpop.permute.xlu1 %623 }
 0x172   :  { %v661_v7 = vmul.f32 %v624_v25, %v549_v10 }
 0x174   :  { %v676_v59 = vadd.f32 %v675_v41, %v661_v7 }
 0x176   :  { %v677_v4 = vadd.f32 %v676_v59, %v662_v55 }
 0x178   :  { %v678_v40 = vadd.f32 %v677_v4, %v663_v15 }
 0x179   :  { %v639_v42 = vpop.permute.xlu1 %638 }
 0x17a   :  { %v664_v26 = vmul.f32 %v639_v42, %v552_v32 }
 0x17c   :  { %v679_v61 = vadd.f32 %v678_v40, %v664_v26 }
 0x17e   :  { %v680_v63 = vadd.f32 %v679_v61, %v665_v0 }
 0x180   :  { %v681_v53 = vadd.f32 %v680_v63, %v666_v5 }
 0x182   :  { %v682_v16 = vrot.slane %v681_v53, 4 }
 0x184   :  { %v683_v33 = vadd.f32 %v682_v16, %v681_v53 }
 0x186   :  { %v684_v3 = vrot.slane %v683_v33, 2 }
 0x188   :  { %v685_v21 = vadd.f32 %v684_v3, %v683_v33 }
 0x18a   :  { %v686_v12 = vrot.slane %v685_v21, 1 }
 0x18c   :  { %v687_v58 = vadd.f32 %v686_v12, %v685_v21 }
 0x18e   :  { %v690_v8 = vadd.f32 %v689_v27, %v687_v58 }
 0x190   :  { %691 = vst [vmem:[#allocation3] sm:$0x1] %v690_v8 }
 0x191   :  { %702 = dma.vmem_to_hbm [thread:$0]  %s698_s12, 16, %s700_s15, [#allocation4]  }
 0x192   :  { %751 = dma.done.wait [#allocation4], 16  }
 0x193   :  { %752 = vsyncadd [#allocation4], 4294967280 }
 0x194   :  { %707 = vsyncpa [#allocation4], 1 }

</bundles_post_ra>
